<compile_context>
chip_gen: v6e
topology: v6e:2x2x1
jax: 0.10.0
libtpu: 0.0.40
codegen_flags: <defaults>
</compile_context>

<pallas_src>
import functools

import jax
import jax.numpy as jnp
from jax.experimental import pallas as pl
from jax.experimental.pallas import tpu as pltpu


def se_kernel(x_ref, w1_ref, w2_ref, o_ref, *, inv_hw):
    # x_ref/o_ref block: (B_TILE, C, HW_pad); w1: (C, hidden); w2: (hidden, C)
    # --- squeeze: global average pool over spatial dims -> (B_TILE, C) ---
    # Padded spatial columns are zero, so sum * (1 / true_HW) is the exact mean.
    y = jnp.sum(x_ref[...], axis=-1) * inv_hw                    # (B_TILE, C)
    # --- excitation: batched FC -> ReLU -> FC -> sigmoid ---
    h = jnp.dot(y, w1_ref[...], preferred_element_type=jnp.float32)
    h = jnp.maximum(h, 0.0)                                      # (B_TILE, hidden)
    s = jnp.dot(h, w2_ref[...], preferred_element_type=jnp.float32)
    s = jax.nn.sigmoid(s)                                        # (B_TILE, C)
    # --- scale: second VMEM read of x (keeps vreg pressure bounded); the gate
    # broadcasts along the lane (HW) axis.
    o_ref[...] = (x_ref[...] * s[:, :, None]).astype(o_ref.dtype)


def _choose_b_tile(B, C, HW_pad, itemsize, vmem_budget_bytes=32 << 20):
    """Largest per-step batch tile whose double-buffered in+out tiles fit VMEM."""
    per_image = 4 * C * HW_pad * itemsize        # 2x input buf + 2x output buf
    max_tile = max(1, vmem_budget_bytes // per_image)
    if B >= 2:
        # Keep grid extent >= 2 so v7x's second TensorCore gets work.
        max_tile = min(max_tile, max(1, B // 2))
    b_tile = int(min(B, max_tile))
    while B % b_tile != 0:                       # prefer an even split
        b_tile -= 1
    return b_tile


def se_module(x, w1, w2):
    """x: (B, C, H, W); w1: (C, C//r); w2: (C//r, C). Returns x * gate."""
    B, C, H, W = x.shape
    hidden = w1.shape[1]
    HW = H * W
    HW_pad = ((HW + 127) // 128) * 128           # lane-dense last dim

    x_flat = x.reshape(B, C, HW)
    if HW_pad != HW:
        x_flat = jnp.pad(x_flat, ((0, 0), (0, 0), (0, HW_pad - HW)))

    b_tile = _choose_b_tile(B, C, HW_pad, x.dtype.itemsize)
    grid = (B // b_tile,)

    kernel = functools.partial(se_kernel, inv_hw=1.0 / HW)

    cost = pl.CostEstimate(
        flops=2 * B * C * hidden * 2 + 2 * B * C * HW,
        transcendentals=B * C,
        bytes_accessed=2 * B * C * HW_pad * x.dtype.itemsize
        + 2 * C * hidden * w1.dtype.itemsize,
    )

    out = pl.pallas_call(
        kernel,
        out_shape=jax.ShapeDtypeStruct((B, C, HW_pad), x.dtype),
        grid_spec=pltpu.PrefetchScalarGridSpec(
            num_scalar_prefetch=0,
            grid=grid,
            in_specs=[
                pl.BlockSpec((b_tile, C, HW_pad), lambda b: (b, 0, 0)),
                pl.BlockSpec((C, hidden), lambda b: (0, 0)),
                pl.BlockSpec((hidden, C), lambda b: (0, 0)),
            ],
            out_specs=pl.BlockSpec((b_tile, C, HW_pad), lambda b: (b, 0, 0)),
        ),
        compiler_params=pltpu.CompilerParams(
            dimension_semantics=("parallel",),
            vmem_limit_bytes=48 << 20,
        ),
        cost_estimate=cost,
    )(x_flat, w1, w2)

    if HW_pad != HW:
        out = out[:, :, :HW]
    return out.reshape(B, C, H, W)


def se_module_ref(x, w1, w2):
    """Pure-JAX reference matching the PyTorch forward (bias=False)."""
    y = jnp.mean(x, axis=(2, 3))                 # (B, C)
    y = jnp.maximum(y @ w1, 0.0)                 # (B, C//r)
    y = jax.nn.sigmoid(y @ w2)                   # (B, C)
    return x * y[:, :, None, None]


if __name__ == "__main__":
    key = jax.random.PRNGKey(0)
    B, C, H, W = 4, 64, 16, 16
    reduction = 16
    hidden = C // reduction                      # = 4

    k_x, k_w1, k_w2 = jax.random.split(key, 3)
    x = jax.random.normal(k_x, (B, C, H, W), dtype=jnp.float32)
    # Deterministic synthetic weights (already stored transposed vs PyTorch).
    w1 = jax.random.normal(k_w1, (C, hidden), dtype=jnp.float32) * 0.1
    w2 = jax.random.normal(k_w2, (hidden, C), dtype=jnp.float32) * 0.1

    out = se_module(x, w1, w2)
    jax.block_until_ready(out)

    ref = se_module_ref(x, w1, w2)
    assert out.shape == (B, C, H, W)
    assert jnp.allclose(out, ref, atol=1e-5, rtol=1e-5), "mismatch vs reference"

    print("KERNEL_OK")
</pallas_src>

<mosaic_0001>
module attributes {stable_mosaic.version = 11 : i64} {
  func.func @se_kernel(%arg0: i32, %arg1: memref<2x64x256xf32, #tpu.memory_space<vmem>>, %arg2: memref<64x4xf32, #tpu.memory_space<vmem>>, %arg3: memref<4x64xf32, #tpu.memory_space<vmem>>, %arg4: memref<2x64x256xf32, #tpu.memory_space<vmem>>) attributes {dimension_semantics = [#tpu.dimension_semantics<parallel>], iteration_bounds = array<i64: 2>, scalar_prefetch = 0 : i64, scratch_operands = 0 : i64, tpu.core_type = #tpu.core_type<tc>, window_params = [{transform_indices = @transform_0, window_bounds = array<i64: 2, 64, 256>}, {pipeline_mode = #tpu.pipeline_mode<synchronous>, transform_indices = @transform_1, window_bounds = array<i64: 64, 4>}, {pipeline_mode = #tpu.pipeline_mode<synchronous>, transform_indices = @transform_2, window_bounds = array<i64: 4, 64>}, {transform_indices = @transform_3, window_bounds = array<i64: 2, 64, 256>}]} {
    %c0 = arith.constant 0 : index
    %c0_0 = arith.constant 0 : index
    %c0_1 = arith.constant 0 : index
    %0 = vector.load %arg1[%c0, %c0_0, %c0_1] : memref<2x64x256xf32, #tpu.memory_space<vmem>>, vector<2x64x256xf32>
    %cst = arith.constant dense<0.000000e+00> : vector<2x64xf32>
    %1 = vector.multi_reduction <add>, %0, %cst [2] : vector<2x64x256xf32> to vector<2x64xf32>
    %cst_2 = arith.constant 3.906250e-03 : f32
    %2 = vector.broadcast %cst_2 : f32 to vector<2x64xf32>
    %3 = arith.mulf %1, %2 : vector<2x64xf32>
    %c0_3 = arith.constant 0 : index
    %c0_4 = arith.constant 0 : index
    %4 = vector.load %arg2[%c0_3, %c0_4] : memref<64x4xf32, #tpu.memory_space<vmem>>, vector<64x4xf32>
    %cst_5 = arith.constant dense<0.000000e+00> : vector<2x4xf32>
    %5 = tpu.matmul %3, %4, %cst_5 {dimension_numbers = #tpu.dot_dimension_numbers<[1], [0], [0], [1], [0, 0, 1, 1], [], []>} : vector<2x64xf32>, vector<64x4xf32>, vector<2x4xf32> -> vector<2x4xf32>
    %cst_6 = arith.constant 0.000000e+00 : f32
    %6 = vector.broadcast %cst_6 : f32 to vector<2x4xf32>
    %7 = arith.maximumf %5, %6 : vector<2x4xf32>
    %c0_7 = arith.constant 0 : index
    %c0_8 = arith.constant 0 : index
    %8 = vector.load %arg3[%c0_7, %c0_8] : memref<4x64xf32, #tpu.memory_space<vmem>>, vector<4x64xf32>
    %cst_9 = arith.constant dense<0.000000e+00> : vector<2x64xf32>
    %9 = tpu.matmul %7, %8, %cst_9 {dimension_numbers = #tpu.dot_dimension_numbers<[1], [0], [0], [1], [0, 0, 1, 1], [], []>} : vector<2x4xf32>, vector<4x64xf32>, vector<2x64xf32> -> vector<2x64xf32>
    %10 = arith.negf %9 : vector<2x64xf32>
    %11 = math.exp %10 : vector<2x64xf32>
    %cst_10 = arith.constant 1.000000e+00 : f32
    %12 = vector.broadcast %cst_10 : f32 to vector<2x64xf32>
    %13 = arith.addf %12, %11 : vector<2x64xf32>
    %14 = arith.divf %12, %13 : vector<2x64xf32>
    %c0_11 = arith.constant 0 : index
    %c0_12 = arith.constant 0 : index
    %c0_13 = arith.constant 0 : index
    %15 = vector.load %arg1[%c0_11, %c0_12, %c0_13] : memref<2x64x256xf32, #tpu.memory_space<vmem>>, vector<2x64x256xf32>
    %16 = vector.shape_cast %14 : vector<2x64xf32> to vector<2x64x1xf32>
    %17 = vector.broadcast %16 : vector<2x64x1xf32> to vector<2x64x256xf32>
    %18 = arith.mulf %15, %17 : vector<2x64x256xf32>
    %c0_14 = arith.constant 0 : index
    %c0_15 = arith.constant 0 : index
    %c0_16 = arith.constant 0 : index
    %19 = vector.load %arg4[%c0_14, %c0_15, %c0_16] : memref<2x64x256xf32, #tpu.memory_space<vmem>>, vector<2x64x256xf32>
    tpu.vector_store %arg4[%c0_14, %c0_15, %c0_16], %18 {strides = array<i32>} : memref<2x64x256xf32, #tpu.memory_space<vmem>>, vector<2x64x256xf32>,
    return
  }
  func.func @transform_0(%arg0: i32) -> (i32, i32, i32) {
    %c0_i32 = arith.constant 0 : i32
    %c0_i32_0 = arith.constant 0 : i32
    %c0_i32_1 = arith.constant 0 : i32
    return %arg0, %c0_i32, %c0_i32_0 : i32, i32, i32
  }
  func.func @transform_1(%arg0: i32) -> (i32, i32) {
    %c0_i32 = arith.constant 0 : i32
    %c0_i32_0 = arith.constant 0 : i32
    %c0_i32_1 = arith.constant 0 : i32
    return %c0_i32, %c0_i32_0 : i32, i32
  }
  func.func @transform_2(%arg0: i32) -> (i32, i32) {
    %c0_i32 = arith.constant 0 : i32
    %c0_i32_0 = arith.constant 0 : i32
    %c0_i32_1 = arith.constant 0 : i32
    return %c0_i32, %c0_i32_0 : i32, i32
  }
  func.func @transform_3(%arg0: i32) -> (i32, i32, i32) {
    %c0_i32 = arith.constant 0 : i32
    %c0_i32_0 = arith.constant 0 : i32
    %c0_i32_1 = arith.constant 0 : i32
    return %arg0, %c0_i32, %c0_i32_0 : i32, i32, i32
  }
}

</mosaic_0001>

<bundles_post_ra>
// kernel: tpu_custom_call.1
= control target key start
LH: loop header
LB: loop body
LE: loop exit
PB: predicated region body
PF: predicated region fallthrough
CT: control target
= control target key end

     0   :  { %8 = vsyncpa [#allocation3], 0  ;;  %s1432_s0 = inlined_call_operand.hbm [shape: f32[4,64,256], index: 0, kind: input, shape index: {}]   ;;  %s1433_s1 = inlined_call_operand.vmem [shape: f32[64,4], index: 1, kind: input, shape index: {}]   ;;  %s1434_s2 = inlined_call_operand.vmem [shape: f32[4,64], index: 2, kind: input, shape index: {}]   ;;  %s1435_s3 = inlined_call_operand.hbm [shape: f32[4,64,256], index: 3, kind: output, shape index: {}]  }
   0x1   :  { %10 = vsyncpa [#allocation3 + $0x1], 0 }
   0x2   :  { %11 = vsyncpa [#allocation4], 0 }
   0x3   :  { %13 = vsyncpa [#allocation4 + $0x1], 0  ;;  %s1026_s12 = smov 0   ;;  %s1028_s13 = smov 0  }
   0x4   :  { %s1030_s14 = smov 0   ;;  %s1032_s15 = smov 0  }
   0x5 LB: > { %s1047_s16 = sadd.s32 4294967295, %s996_s15   ;;  %s789_s17 = sadd.s32 4294967294, %s996_s15   ;;  %s996_s15 = sphi %s1032_s15, %s1471_s15   ;;  %s992_s14 = sphi %s1030_s14, %s1470_s14   ;;  %s988_s13 = sphi %s1028_s13, %s1469_s13   ;;  %s984_s12 = sphi %s1026_s12, %s1468_s12  }
   0x6   : > { %s1051_s18 = sadd.s32 1, %s996_s15   ;;  %s26_s19 = sadd.s32 1, %s992_s14 }
   0x7   : > { %s23_s20 = ssub.s32 %s996_s15, %s1051_s18  ;;  %p33_p0 = scmp.ne.s32.totalorder %s992_s14, %s988_s13 }
   0x8   : > { %p24_p1 = scmp.eq.s32.totalorder %s23_s20, 0  ;;  %p34_p2 = scmp.eq.s32.totalorder %s996_s15, 0 }
   0x9   : > { %p39_p3 = scmp.ne.s32.totalorder %s988_s13, %s984_s12  ;;  %p40_p4 = scmp.eq.s32.totalorder %s1047_s16, 0 }
   0xa   : > { %s1063_s21 = scalar_select %p24_p1, %s992_s14, %s26_s19  }
   0xb   : > { %p1065_p5 = por %p34_p2, %p33_p0  ;;  %p1069_p6 = por %p40_p4, %p39_p3 }
   0xc   : > { %p105_p7 = scmp.eq.s32.totalorder %s1047_s16, 1  ;;  %p111_p8 = scmp.eq.s32.totalorder %s789_s17, 1 }
   0xd   : > { %s1446_s23 = scalar_select %p1069_p6, 1, 0 }
   0xe   : > { %p860_p10 = scmp.lt.s32.totalorder %s996_s15, 2  ;;  %p1076_p11 = por %p105_p7, %p33_p0 }
   0xf   : > { %p1080_p12 = por %p111_p8, %p39_p3  ;;  %s137_s26 = sand.u32 1, %s992_s14  }
  0x10   : > { %s1447_s24 = scalar_select %p1076_p11, 1, 0 }
  0x11   : > { %s1448_s25 = scalar_select %p1080_p12, 1, 0 }
  0x12   : > { %s810_s27 = sshll.u32 %s996_s15, 12  ;;  %s792_s28 = sshll.u32 %s137_s26, 8 }
  0x13   : > { %s1089_s4 = scalar_lea.hbm %s1432_s0, %s810_s27  ;;  %s141_s5 = scalar_lea.vmem [#allocation2], %s792_s28 }
  0x14   : > { %s149_s6 = sshll.u32 %s141_s5, 4  ;;  %p1093_p13 = pnand %p860_p10, %p1065_p5  ;;  %s1097_s6 = int_to_ptr.vmem [resolvable:$true] %s149_s6 }
  0x15   : > { %s1099_s8 = scalar_lea.sflag [#allocation3], %s137_s26  ;;  %s904_s9 = scalar_lea.hbm %s1089_s4, 4096 }
  0x16   : > { %p905_p0 = scmp.ne.s32.totalorder %s1089_s4, %s904_s9  ;;  %p906_p1 = pneg %p1093_p13 }
  0x17   : > { %s909_s17 = scalar_lea.hbm %s1432_s0, 8192  ;;  %p910_p4 = scmp.lt.s32.totalorder %s1089_s4, %s1432_s0 }
  0x18   : > { %p907_p2 = pnand %p906_p1, %p905_p0  ;;  %p911_p5 = scmp.lt.s32.totalorder %s909_s17, %s904_s9 }
  0x1a   : > { %p908_p3 = pneg %p907_p2  ;;  %p912_p7 = por %p911_p5, %p910_p4 }
  0x1c   : > { %p913_p8 = pnand %p912_p7, %p908_p3 }
  0x1e   : > { %916 = shalt.err (!%p913_p8)
}
  0x1f   : > { %s917_s22 = scalar_lea.vmem %s1097_s6, 4096  ;;  %s998_s26 = smov [#allocation2]  }
  0x20   : > { %p918_p10 = scmp.ne.s32.totalorder %s1097_s6, %s917_s22  ;;  %s922_s27 = sshll.u32 %s998_s26, 4  ;;  %s923_s27 = int_to_ptr.vmem [resolvable:$false] %s922_s27 }
  0x21   : > { %s924_s28 = scalar_lea.vmem %s923_s27, 8192  ;;  %p925_p2 = scmp.lt.s32.totalorder %s1097_s6, %s923_s27 }
  0x22   : > { %p920_p9 = pnand %p918_p10, %p906_p1  ;;  %p926_p12 = scmp.lt.s32.totalorder %s924_s28, %s917_s22 }
  0x24   : > { %p921_p0 = pneg %p920_p9  ;;  %p927_p11 = por %p926_p12, %p925_p2 }
  0x26   : > { %p928_p6 = pnand %p927_p11, %p921_p0 }
  0x28   : > { %931 = shalt.err (!%p928_p6)
}
  0x29   : > { %s999_s29 = smov 256   ;;  %s1000_s30 = smov 16  }
  0x2a   : > { %855 = dma.hbm_to_vmem [thread:$0]  (!%p1093_p13), %s1089_s4, 4096, %s1097_s6, %s1099_s8, %s999_s29, %s999_s29, %s1000_s30  }
  0x2b   : > { %p796_p9 = scmp.ge.s32.totalorder %s996_s15, 1  ;;  %p157_p1 = scmp.lt.s32.totalorder %s996_s15, 3 }
  0x2d   : > { %p158_p3 = pnand %p796_p9, %p157_p1 }
  0x2f   : > { %161 = sbr.rel (%p158_p3) target bundleno = 817 (0x331), region = 32 }
  0x34   : > { %s1123_s5 = sand.u32 1, %s988_s13   ;;  %p1450_p6 = scmp.ne.s32.totalorder %s1446_s23, 0 }
  0x35   : > { %s797_s9 = sshll.u32 %s1123_s5, 8  ;;  %s164_s10 = scalar_lea.sflag [#allocation3], %s1123_s5 }
  0x36   : > { %s1129_s11 = scalar_lea.vmem [#allocation2], %s797_s9 }
  0x37   : > { %975 = dma.done.wait (%p1450_p6), %s164_s10, 4096  }
  0x38   : > { %977 = vsyncadd (%p1450_p6), %s164_s10, 4294963200  ;;  %v1136_v0 = vld [vmem:[%s1129_s11 + $0x80] sm:$0xff]  ;;  %v1139_v1 = vld [vmem:[%s1129_s11 + $0x88] sm:$0xff]  ;;  %v1001_v48 = vmov 0.0   ;;  %vm1002_vm0 = vmmov 0   ;;  %v312_v61 = vlaneseq  ;;  %vm323_vm1 = vcmask 130112  }
  0x39   : > { %v1142_v2 = vld [vmem:[%s1129_s11] sm:$0xff]  ;;  %v248_v3 = vadd.f32 %v1139_v1, %v1136_v0  ;;  %v1147_v4 = vld [vmem:[%s1129_s11 + $0x8] sm:$0xff]  ;;  %v1150_v5 = vld [vmem:[%s1129_s11 + $0x90] sm:$0xff]  ;;  %824 = vmatprep.subr.mxu0 %v1001_v48  ;;  %843 = vmatprep.subr.mxu1 %v1001_v48  ;;  %vm330_vm2 = vcmask 195712   ;;  %vm337_vm3 = vcmask 261312   ;;  %vm344_vm4 = vcmask 326912  }
  0x3a   : > { %v1153_v6 = vld [vmem:[%s1129_s11 + $0x98] sm:$0xff]  ;;  %v224_v7 = vadd.f32 %v1147_v4, %v1142_v2  ;;  %v1158_v8 = vld [vmem:[%s1129_s11 + $0x10] sm:$0xff]  ;;  %v1168_v12 = vld [vmem:[%s1129_s11 + $0xa0] sm:$0xff]  ;;  %840 = vmatprep.mubr.msk.f32.mxu0 %vm1002_vm0, %v1001_v48  ;;  %845 = vmatprep.mubr.msk.f32.mxu1 %vm1002_vm0, %v1001_v48  ;;  %vm351_vm5 = vcmask 392512   ;;  %vm358_vm6 = vcmask 458112   ;;  %vm365_vm7 = vcmask 523712  }
  0x3b   : > { %v1161_v9 = vld [vmem:[%s1129_s11 + $0x18] sm:$0xff]  ;;  %249 = vadd.xlane.f32.xlu1 %v248_v3  ;;  %v251_v10 = vadd.f32 %v1153_v6, %v1150_v5  ;;  %v1171_v13 = vld [vmem:[%s1129_s11 + $0xa8] sm:$0xff]  ;;  %v1174_v14 = vld [vmem:[%s1129_s11 + $0x20] sm:$0xff]  ;;  %v313_v3 = vand.u32 127, %v312_v61  ;;  %vm406_vm8 = vcmask 1041409   ;;  %vm408_vm9 = vcmask 523264  }
  0x3c   : > { %225 = vadd.xlane.f32.xlu0 %v224_v7  ;;  %v227_v11 = vadd.f32 %v1161_v9, %v1158_v8  ;;  %v1177_v15 = vld [vmem:[%s1129_s11 + $0x28] sm:$0xff]  ;;  %v254_v16 = vadd.f32 %v1171_v13, %v1168_v12  ;;  %v1184_v18 = vld [vmem:[%s1129_s11 + $0xb0] sm:$0xff]  ;;  %v1187_v19 = vld [vmem:[%s1129_s11 + $0xb8] sm:$0xff]  ;;  %vm487_vm10 = vcmask 1043456   ;;  %vm483_vm11 = vcmask 31744   ;;  %s1320_s6 = scalar_lea.vmem [#allocation5], %s797_s9 }
  0x3d   : > { %v230_v17 = vadd.f32 %v1177_v15, %v1174_v14  ;;  %1451 = vst [vmem:[#allocation8_spill] sm:$0xff] %v1187_v19  ;;  %v1190_v20 = vld [vmem:[%s1129_s11 + $0x30] sm:$0xff]  ;;  %v1193_v21 = vld [vmem:[%s1129_s11 + $0x38] sm:$0xff]  ;;  %v257_v22 = vadd.f32 %v1187_v19, %v1184_v18  ;;  %v1200_v24 = vld [vmem:[%s1129_s11 + $0xc0] sm:$0xff]  ;;  %s812_s9 = sshll.u32 %s1047_s16, 12  ;;  %s716_s7 = sshll.u32 %s1320_s6, 4  ;;  %s1385_s7 = int_to_ptr.vmem [resolvable:$true] %s716_s7 }
  0x3e   : > { %v233_v23 = vadd.f32 %v1193_v21, %v1190_v20  ;;  %v1203_v25 = vld [vmem:[%s1129_s11 + $0xc8] sm:$0xff]  ;;  %v1206_v26 = vld [vmem:[%s1129_s11 + $0x40] sm:$0xff]  ;;  %v1216_v30 = vld [vmem:[%s1129_s11 + $0xd0] sm:$0xff]  ;;  %s1383_s19 = scalar_lea.hbm %s1435_s3, %s812_s9  ;;  %s702_s16 = scalar_lea.sflag [#allocation4], %s1123_s5 }
  0x3f   : > { %252 = vadd.xlane.f32.xlu1 %v251_v10  ;;  %v1209_v27 = vld [vmem:[%s1129_s11 + $0x48] sm:$0xff]  ;;  %v260_v28 = vadd.f32 %v1203_v25, %v1200_v24  ;;  %1452 = vst [vmem:[#allocation9_spill] sm:$0xff] %v1216_v30  ;;  %v1219_v31 = vld [vmem:[%s1129_s11 + $0xd8] sm:$0xff]  ;;  %v1222_v32 = vld [vmem:[%s1129_s11 + $0x50] sm:$0xff]  ;;  %v1287_v10 = vshrl.u32 %v312_v61, 7  ;;  %s932_s20 = scalar_lea.vmem %s1385_s7, 4096 }
  0x40   : > { %228 = vadd.xlane.f32.xlu0 %v227_v11  ;;  %v236_v29 = vadd.f32 %v1209_v27, %v1206_v26  ;;  %1453 = vst [vmem:[#allocation10_spill] sm:$0xff] %v1219_v31  ;;  %v1225_v33 = vld [vmem:[%s1129_s11 + $0x58] sm:$0xff]  ;;  %v263_v34 = vadd.f32 %v1219_v31, %v1216_v30  ;;  %v1232_v36 = vld [vmem:[%s1129_s11 + $0xe0] sm:$0xff]  ;;  %v1235_v37 = vld [vmem:[%s1129_s11 + $0xe8] sm:$0xff]  ;;  %p933_p11 = scmp.ne.s32.totalorder %s1385_s7, %s932_s20  ;;  %p1465_p12 = scmp.ne.s32.totalorder %s1447_s24, 0 }
  0x41   : > { %v239_v35 = vadd.f32 %v1225_v33, %v1222_v32  ;;  %1454 = vst [vmem:[#allocation11_spill] sm:$0xff] %v1232_v36  ;;  %1455 = vst [vmem:[#allocation12_spill] sm:$0xff] %v1235_v37  ;;  %v1238_v38 = vld [vmem:[%s1129_s11 + $0x60] sm:$0xff]  ;;  %v1241_v39 = vld [vmem:[%s1129_s11 + $0x68] sm:$0xff]  ;;  %v266_v40 = vadd.f32 %v1235_v37, %v1232_v36  ;;  %s1003_s22 = smov [#allocation5]  }
  0x42   : > { %v242_v41 = vadd.f32 %v1241_v39, %v1238_v38  ;;  %v1248_v42 = vld [vmem:[%s1129_s11 + $0xf0] sm:$0xff]  ;;  %v1251_v43 = vld [vmem:[%s1129_s11 + $0xf8] sm:$0xff]  ;;  %v293_v51 = vld [vmem:[%s1433_s1 + $0x28] sm:$0xff]  ;;  %p934_p13 = pnand %p933_p11, %p1465_p12  ;;  %s936_s26 = sshll.u32 %s1003_s22, 4  ;;  %s937_s26 = int_to_ptr.vmem [resolvable:$false] %s936_s26 }
  0x43   : > { %255 = vadd.xlane.f32.xlu1 %v254_v16  ;;  %1456 = vst [vmem:[#allocation13_spill] sm:$0xff] %v1248_v42  ;;  %1457 = vst [vmem:[#allocation14_spill] sm:$0xff] %v1251_v43  ;;  %v1254_v44 = vld [vmem:[%s1129_s11 + $0x70] sm:$0xff]  ;;  %v1257_v45 = vld [vmem:[%s1129_s11 + $0x78] sm:$0xff]  ;;  %v269_v46 = vadd.f32 %v1251_v43, %v1248_v42  ;;  %v318_v16 = vadd.s32 4294967288, %v313_v3  ;;  %s938_s27 = scalar_lea.vmem %s937_s26, 8192  ;;  %p939_p5 = scmp.lt.s32.totalorder %s1385_s7, %s937_s26 }
  0x44   : > { %231 = vadd.xlane.f32.xlu0 %v230_v17  ;;  %v245_v47 = vadd.f32 %v1257_v45, %v1254_v44  ;;  %v295_v49 = vld [vmem:[%s1433_s1 + $0x38] sm:$0xff]  ;;  %v294_v50 = vld [vmem:[%s1433_s1 + $0x30] sm:$0xff]  ;;  %v292_v52 = vld [vmem:[%s1433_s1 + $0x20] sm:$0xff]  ;;  %v325_v17 = vadd.s32 4294967280, %v313_v3  ;;  %p935_p4 = pneg %p934_p13  ;;  %p940_p7 = scmp.lt.s32.totalorder %s938_s27, %s932_s20 }
  0x45   : > { %825 = vmatpush3.msra.mxu0 %v295_v49  ;;  %v291_v53 = vld [vmem:[%s1433_s1 + $0x18] sm:$0xff]  ;;  %v290_v54 = vld [vmem:[%s1433_s1 + $0x10] sm:$0xff]  ;;  %v289_v55 = vld [vmem:[%s1433_s1 + $0x8] sm:$0xff] }
  0x46   : > { %826 = vmatprep.subr.mxu0 %v1001_v48  ;;  %v288_v56 = vld [vmem:[%s1433_s1] sm:$0xff]  ;;  %p941_p8 = por %p940_p7, %p939_p5 }
  0x47   : > { %258 = vadd.xlane.f32.xlu1 %v257_v22  ;;  %827 = vmatpush3.msra.mxu0 %v294_v50  ;;  %v332_v22 = vadd.s32 4294967272, %v313_v3 }
  0x48   : > { %234 = vadd.xlane.f32.xlu0 %v233_v23  ;;  %828 = vmatprep.subr.mxu0 %v1001_v48  ;;  %v339_v23 = vadd.s32 4294967264, %v313_v3  ;;  %p942_p10 = pnand %p941_p8, %p935_p4 }
  0x49   : > { %829 = vmatpush3.msra.mxu0 %v293_v51 }
  0x4a   : > { %830 = vmatprep.subr.mxu0 %v1001_v48  ;;  %v342_v49 = vsub.s32 %v339_v23, %v1287_v10  ;;  %v360_v23 = vadd.s32 4294967240, %v313_v3 }
  0x4b   : > { %261 = vadd.xlane.f32.xlu1 %v260_v28  ;;  %831 = vmatpush3.msra.mxu0 %v292_v52 }
  0x4c   : > { %237 = vadd.xlane.f32.xlu0 %v236_v29  ;;  %832 = vmatprep.subr.mxu0 %v1001_v48  ;;  %v346_v29 = vadd.s32 4294967256, %v313_v3 }
  0x4d   : > { %833 = vmatpush3.msra.mxu0 %v291_v53 }
  0x4e   : > { %834 = vmatprep.subr.mxu0 %v1001_v48  ;;  %v349_v52 = vsub.s32 %v346_v29, %v1287_v10 }
  0x4f   : > { %264 = vadd.xlane.f32.xlu1 %v263_v34  ;;  %835 = vmatpush3.msra.mxu0 %v290_v54  ;;  %v316_v34 = vsub.s32 %v313_v3, %v1287_v10 }
  0x50   : > { %240 = vadd.xlane.f32.xlu0 %v239_v35  ;;  %836 = vmatprep.subr.mxu0 %v1001_v48 }
  0x51   : > { %837 = vmatpush3.msra.mxu0 %v289_v55 }
  0x52   : > { %838 = vmatprep.subr.mxu0 %v1001_v48  ;;  %v335_v48 = vsub.s32 %v332_v22, %v1287_v10 }
  0x53   : > { %267 = vadd.xlane.f32.xlu1 %v266_v40  ;;  %839 = vmatpush3.msra.mxu0 %v288_v56  ;;  %v321_v40 = vsub.s32 %v318_v16, %v1287_v10 }
  0x54   : > { %243 = vadd.xlane.f32.xlu0 %v242_v41  ;;  %v328_v41 = vsub.s32 %v325_v17, %v1287_v10 }
  0x57   : > { %270 = vadd.xlane.f32.xlu1 %v269_v46  ;;  %v353_v46 = vadd.s32 4294967248, %v313_v3  ;;  %v363_v3 = vsub.s32 %v360_v23, %v1287_v10 }
  0x58   : > { %246 = vadd.xlane.f32.xlu0 %v245_v47 }
  0xc4   : > { %v250_v57 = vpop.xlane.xlu1 %249 }
  0xc5   : > { %v226_v58 = vpop.xlane.xlu0 %225  ;;  %v280_v54 = vmul.f32 0.00390625, %v250_v57 }
  0xc6   : > { %v272_v16 = vmul.f32 0.00390625, %v226_v58 }
  0xc7   : > { %v370_v37 = vrot.slane %v280_v54, %v316_v34 }
  0xc8   : > { %v253_v59 = vpop.xlane.xlu1 %252  ;;  %v317_v19 = vrot.slane %v272_v16, %v316_v34 }
  0xc9   : > { %v229_v60 = vpop.xlane.xlu0 %228  ;;  %v281_v47 = vmul.f32 0.00390625, %v253_v59  ;;  %v356_v59 = vsub.s32 %v353_v46, %v1287_v10 }
  0xca   : > { %v273_v50 = vmul.f32 0.00390625, %v229_v60 }
  0xcb   : > { %v374_v22 = vrot.slane %v281_v47, %v321_v40 }
  0xcc   : > { %v256_v62 = vpop.xlane.xlu1 %255  ;;  %v322_v60 = vrot.slane %v273_v50, %v321_v40 }
  0xcd   : > { %v232_v63 = vpop.xlane.xlu0 %231  ;;  %v282_v51 = vmul.f32 0.00390625, %v256_v62  ;;  %v375_v46 = vsel %vm323_vm1, %v374_v22, %v370_v37  ;;  %v482_v22 = vld [vmem:[%s1434_s2] sm:$0xf] }
  0xce   : > { %v274_v55 = vmul.f32 0.00390625, %v232_v63  ;;  %v324_v40 = vsel %vm323_vm1, %v322_v60, %v317_v19  ;;  %844 = vmatpush3.msk.msra.mxu1 %vm487_vm10, %v482_v22 }
  0xcf   : > { %v379_v62 = vrot.slane %v282_v51, %v328_v41 }
  0xd0   : > { %v259_v7 = vpop.xlane.xlu1 %258  ;;  %v329_v57 = vrot.slane %v274_v55, %v328_v41 }
  0xd1   : > { %v235_v11 = vpop.xlane.xlu0 %234  ;;  %v283_v56 = vmul.f32 0.00390625, %v259_v7  ;;  %v380_v50 = vsel %vm330_vm2, %v379_v62, %v375_v46 }
  0xd2   : > { %v275_v17 = vmul.f32 0.00390625, %v235_v11  ;;  %v331_v54 = vsel %vm330_vm2, %v329_v57, %v324_v40 }
  0xd3   : > { %v384_v63 = vrot.slane %v283_v56, %v335_v48 }
  0xd4   : > { %v262_v28 = vpop.xlane.xlu1 %261  ;;  %v336_v58 = vrot.slane %v275_v17, %v335_v48 }
  0xd5   : > { %v238_v35 = vpop.xlane.xlu0 %237  ;;  %v284_v43 = vmul.f32 0.00390625, %v262_v28  ;;  %v385_v34 = vsel %vm337_vm3, %v384_v63, %v380_v50 }
  0xd6   : > { %v276_v42 = vmul.f32 0.00390625, %v238_v35  ;;  %v338_v37 = vsel %vm337_vm3, %v336_v58, %v331_v54 }
  0xd7   : > { %v389_v11 = vrot.slane %v284_v43, %v342_v49 }
  0xd8   : > { %v265_v53 = vpop.xlane.xlu1 %264  ;;  %v343_v47 = vrot.slane %v276_v42, %v342_v49 }
  0xd9   : > { %v241_v61 = vpop.xlane.xlu0 %240  ;;  %v285_v31 = vmul.f32 0.00390625, %v265_v53 }
  0xda   : > { %v277_v30 = vmul.f32 0.00390625, %v241_v61  ;;  %v345_v19 = vsel %vm344_vm4, %v343_v47, %v338_v37  ;;  %v604_v47 = vsub.s32 1, %v1287_v10 }
  0xdb   : > { %v394_v35 = vrot.slane %v285_v31, %v349_v52  ;;  %v390_v31 = vsel %vm344_vm4, %v389_v11, %v385_v34  ;;  %v569_v11 = vsub.s32 0, %v1287_v10 }
  0xdc   : > { %v268_v29 = vpop.xlane.xlu1 %267  ;;  %v350_v51 = vrot.slane %v277_v30, %v349_v52 }
  0xdd   : > { %v286_v7 = vmul.f32 0.00390625, %v268_v29  ;;  %v244_v36 = vpop.xlane.xlu0 %243  ;;  %v395_v49 = vsel %vm351_vm5, %v394_v35, %v390_v31 }
  0xde   : > { %v278_v28 = vmul.f32 0.00390625, %v244_v36  ;;  %v352_v52 = vsel %vm351_vm5, %v350_v51, %v345_v19 }
  0xdf   : > { %v399_v53 = vrot.slane %v286_v7, %v356_v59 }
  0xe0   : > { %v271_v41 = vpop.xlane.xlu1 %270  ;;  %v357_v48 = vrot.slane %v278_v28, %v356_v59 }
  0xe1   : > { %v287_v43 = vmul.f32 0.00390625, %v271_v41  ;;  %v247_v36 = vpop.xlane.xlu0 %246  ;;  %v400_v55 = vsel %vm358_vm6, %v399_v53, %v395_v49 }
  0xe2   : > { %v279_v42 = vmul.f32 0.00390625, %v247_v36  ;;  %v359_v61 = vsel %vm358_vm6, %v357_v48, %v352_v52  ;;  %v1458_v52 = vld [vmem:[#allocation8_spill] sm:$0xff] }
  0xe3   : > { %v404_v30 = vrot.slane %v287_v43, %v363_v3 }
  0xe4   : > { %v364_v56 = vrot.slane %v279_v42, %v363_v3 }
  0xe5   : > { %v405_v16 = vsel %vm365_vm7, %v404_v30, %v400_v55 }
  0xe6   : > { %v366_v17 = vsel %vm365_vm7, %v364_v56, %v359_v61  ;;  %v1460_v61 = vld [vmem:[#allocation12_spill] sm:$0xff] }
  0xe7   : > { %v407_v59 = vsel %vm406_vm8, %v405_v16, %v366_v17  ;;  %v1461_v16 = vld [vmem:[#allocation9_spill] sm:$0xff] }
  0xe8   : > { %841 = vmatmul.mubr.msk.f32.vlgmr.msra.gmra.mxu0 %vm408_vm9, %v407_v59  ;;  %v1462_v59 = vld [vmem:[#allocation10_spill] sm:$0xff] }
 0x1a8   : > { %v477_v23 = vpop.f32.mrf.mxu0 }
 0x1a9   : > { %v481_v60 = vmax.f32 %v477_v23, 0.0  ;;  %v1463_v23 = vld [vmem:[#allocation13_spill] sm:$0xff] }
 0x1aa   : > { %v842_v62 = vpop.f32.mrf.mxu0 }
 0x1ab   : > { %846 = vmatmul.mubr.msk.f32.vlgmr.msra.gmra.mxu1 %vm483_vm11, %v481_v60  ;;  %v1464_v62 = vld [vmem:[#allocation14_spill] sm:$0xff] }
 0x26b   : > { %v557_v29 = vpop.f32.mrf.mxu1 }
 0x26c   : > { %v802_v57 = vmul.f32 -1.442695, %v557_v29 }
 0x26d   : > { %v847_v63 = vpop.f32.mrf.mxu1 }
 0x26e   : > { %900 = vpow2.f32 %v802_v57 }
 0x27b   : > { %v901_v7 = vpop.eup %900 }
 0x27c   : > { %v564_v58 = vadd.f32 1.0, %v901_v7 }
 0x27e   : > { %902 = vrcp.f32 %v564_v58 }
 0x28b   : > { %v903_v28 = vpop.eup %902 }
 0x28c   : > { %v570_v46 = vrot.slane %v903_v28, %v569_v11  ;;  %v605_v35 = vrot.slane %v903_v28, %v604_v47 }
 0x28e   : > { %576 = vbcast.lane.b32.xlu1 %v570_v46, 264  ;;  %572 = vbcast.lane.b32.xlu0 %v570_v46, 256 }
 0x292   : > { %580 = vbcast.lane.b32.xlu1 %v570_v46, 272  ;;  %588 = vbcast.lane.b32.xlu0 %v570_v46, 288 }
 0x296   : > { %584 = vbcast.lane.b32.xlu1 %v570_v46, 280  ;;  %596 = vbcast.lane.b32.xlu0 %v570_v46, 304 }
 0x29a   : > { %592 = vbcast.lane.b32.xlu1 %v570_v46, 296  ;;  %607 = vbcast.lane.b32.xlu0 %v605_v35, 256 }
 0x29e   : > { %600 = vbcast.lane.b32.xlu1 %v570_v46, 312  ;;  %615 = vbcast.lane.b32.xlu0 %v605_v35, 272 }
 0x2a2   : > { %611 = vbcast.lane.b32.xlu1 %v605_v35, 264  ;;  %623 = vbcast.lane.b32.xlu0 %v605_v35, 288 }
 0x2a6   : > { %619 = vbcast.lane.b32.xlu1 %v605_v35, 280  ;;  %631 = vbcast.lane.b32.xlu0 %v605_v35, 304 }
 0x2aa   : > { %627 = vbcast.lane.b32.xlu1 %v605_v35, 296 }
 0x2ae   : > { %635 = vbcast.lane.b32.xlu1 %v605_v35, 312 }
 0x300   : > { %v577_v3 = vpop.permute.xlu1 %576  ;;  %v573_v40 = vpop.permute.xlu0 %572 }
 0x301   : > { %v639_v50 = vmul.f32 %v577_v3, %v1158_v8  ;;  %v640_v10 = vmul.f32 %v577_v3, %v1161_v9  ;;  %v637_v51 = vmul.f32 %v573_v40, %v1142_v2  ;;  %v638_v53 = vmul.f32 %v573_v40, %v1147_v4 }
 0x303   : > { %671 = vst [vmem:[%s1320_s6 + $0x10] sm:$0xff] %v639_v50  ;;  %672 = vst [vmem:[%s1320_s6 + $0x18] sm:$0xff] %v640_v10 }
 0x304   : > { %669 = vst [vmem:[%s1320_s6] sm:$0xff] %v637_v51  ;;  %670 = vst [vmem:[%s1320_s6 + $0x8] sm:$0xff] %v638_v53  ;;  %v581_v8 = vpop.permute.xlu1 %580  ;;  %v589_v2 = vpop.permute.xlu0 %588 }
 0x305   : > { %v641_v4 = vmul.f32 %v581_v8, %v1174_v14  ;;  %v642_v9 = vmul.f32 %v581_v8, %v1177_v15  ;;  %v645_v41 = vmul.f32 %v589_v2, %v1206_v26  ;;  %v646_v54 = vmul.f32 %v589_v2, %v1209_v27 }
 0x307   : > { %673 = vst [vmem:[%s1320_s6 + $0x20] sm:$0xff] %v641_v4  ;;  %674 = vst [vmem:[%s1320_s6 + $0x28] sm:$0xff] %v642_v9 }
 0x308   : > { %677 = vst [vmem:[%s1320_s6 + $0x40] sm:$0xff] %v645_v41  ;;  %678 = vst [vmem:[%s1320_s6 + $0x48] sm:$0xff] %v646_v54  ;;  %v585_v34 = vpop.permute.xlu1 %584  ;;  %v597_v48 = vpop.permute.xlu0 %596 }
 0x309   : > { %v643_v43 = vmul.f32 %v585_v34, %v1190_v20  ;;  %v644_v14 = vmul.f32 %v585_v34, %v1193_v21  ;;  %v649_v15 = vmul.f32 %v597_v48, %v1238_v38  ;;  %v650_v26 = vmul.f32 %v597_v48, %v1241_v39 }
 0x30b   : > { %675 = vst [vmem:[%s1320_s6 + $0x30] sm:$0xff] %v643_v43  ;;  %676 = vst [vmem:[%s1320_s6 + $0x38] sm:$0xff] %v644_v14 }
 0x30c   : > { %681 = vst [vmem:[%s1320_s6 + $0x60] sm:$0xff] %v649_v15  ;;  %682 = vst [vmem:[%s1320_s6 + $0x68] sm:$0xff] %v650_v26  ;;  %v593_v27 = vpop.permute.xlu1 %592  ;;  %v608_v36 = vpop.permute.xlu0 %607 }
 0x30d   : > { %v647_v37 = vmul.f32 %v593_v27, %v1222_v32  ;;  %v648_v20 = vmul.f32 %v593_v27, %v1225_v33  ;;  %v653_v21 = vmul.f32 %v608_v36, %v1136_v0  ;;  %v654_v38 = vmul.f32 %v608_v36, %v1139_v1 }
 0x30f   : > { %679 = vst [vmem:[%s1320_s6 + $0x50] sm:$0xff] %v647_v37  ;;  %680 = vst [vmem:[%s1320_s6 + $0x58] sm:$0xff] %v648_v20 }
 0x310   : > { %685 = vst [vmem:[%s1320_s6 + $0x80] sm:$0xff] %v653_v21  ;;  %686 = vst [vmem:[%s1320_s6 + $0x88] sm:$0xff] %v654_v38  ;;  %v601_v39 = vpop.permute.xlu1 %600  ;;  %v616_v31 = vpop.permute.xlu0 %615 }
 0x311   : > { %v651_v42 = vmul.f32 %v601_v39, %v1254_v44  ;;  %v652_v32 = vmul.f32 %v601_v39, %v1257_v45  ;;  %v657_v33 = vmul.f32 %v616_v31, %v1168_v12  ;;  %v658_v0 = vmul.f32 %v616_v31, %v1171_v13 }
 0x313   : > { %683 = vst [vmem:[%s1320_s6 + $0x70] sm:$0xff] %v651_v42  ;;  %684 = vst [vmem:[%s1320_s6 + $0x78] sm:$0xff] %v652_v32 }
 0x314   : > { %689 = vst [vmem:[%s1320_s6 + $0xa0] sm:$0xff] %v657_v33  ;;  %690 = vst [vmem:[%s1320_s6 + $0xa8] sm:$0xff] %v658_v0  ;;  %v612_v1 = vpop.permute.xlu1 %611  ;;  %v624_v19 = vpop.permute.xlu0 %623 }
 0x315   : > { %v655_v49 = vmul.f32 %v612_v1, %v1150_v5  ;;  %v656_v44 = vmul.f32 %v612_v1, %v1153_v6  ;;  %v661_v45 = vmul.f32 %v624_v19, %v1200_v24  ;;  %v662_v12 = vmul.f32 %v624_v19, %v1203_v25  ;;  %v1459_v6 = vld [vmem:[#allocation11_spill] sm:$0xff] }
 0x317   : > { %687 = vst [vmem:[%s1320_s6 + $0x90] sm:$0xff] %v655_v49  ;;  %688 = vst [vmem:[%s1320_s6 + $0x98] sm:$0xff] %v656_v44 }
 0x318   : > { %693 = vst [vmem:[%s1320_s6 + $0xc0] sm:$0xff] %v661_v45  ;;  %694 = vst [vmem:[%s1320_s6 + $0xc8] sm:$0xff] %v662_v12  ;;  %v620_v13 = vpop.permute.xlu1 %619  ;;  %v632_v30 = vpop.permute.xlu0 %631 }
 0x319   : > { %v659_v5 = vmul.f32 %v620_v13, %v1184_v18  ;;  %v660_v55 = vmul.f32 %v620_v13, %v1458_v52  ;;  %v665_v56 = vmul.f32 %v632_v30, %v1459_v6  ;;  %v666_v24 = vmul.f32 %v632_v30, %v1460_v61 }
 0x31b   : > { %691 = vst [vmem:[%s1320_s6 + $0xb0] sm:$0xff] %v659_v5  ;;  %692 = vst [vmem:[%s1320_s6 + $0xb8] sm:$0xff] %v660_v55 }
 0x31c   : > { %697 = vst [vmem:[%s1320_s6 + $0xe0] sm:$0xff] %v665_v56  ;;  %698 = vst [vmem:[%s1320_s6 + $0xe8] sm:$0xff] %v666_v24  ;;  %v628_v25 = vpop.permute.xlu1 %627 }
 0x31d   : > { %v663_v17 = vmul.f32 %v628_v25, %v1461_v16  ;;  %v664_v22 = vmul.f32 %v628_v25, %v1462_v59 }
 0x31f   : > { %695 = vst [vmem:[%s1320_s6 + $0xd0] sm:$0xff] %v663_v17  ;;  %696 = vst [vmem:[%s1320_s6 + $0xd8] sm:$0xff] %v664_v22 }
 0x320   : > { %v636_v18 = vpop.permute.xlu1 %635 }
 0x321   : > { %v667_v60 = vmul.f32 %v636_v18, %v1463_v23  ;;  %v668_v29 = vmul.f32 %v636_v18, %v1464_v62 }
 0x323   : > { %699 = vst [vmem:[%s1320_s6 + $0xf0] sm:$0xff] %v667_v60  ;;  %700 = vst [vmem:[%s1320_s6 + $0xf8] sm:$0xff] %v668_v29 }
 0x324   : > { %945 = shalt.err (!%p942_p10)
}
 0x325   : > { %s946_s28 = scalar_lea.hbm %s1383_s19, 4096  ;;  %s950_s10 = scalar_lea.hbm %s1435_s3, 8192 }
 0x326   : > { %p947_p0 = scmp.ne.s32.totalorder %s1383_s19, %s946_s28  ;;  %p951_p1 = scmp.lt.s32.totalorder %s1383_s19, %s1435_s3 }
 0x327   : > { %p952_p3 = scmp.lt.s32.totalorder %s950_s10, %s946_s28 }
 0x328   : > { %p948_p2 = pnand %p947_p0, %p1465_p12 }
 0x329   : > { %p953_p6 = por %p952_p3, %p951_p1 }
 0x32a   : > { %p949_p9 = pneg %p948_p2 }
 0x32c   : > { %p954_p11 = pnand %p953_p6, %p949_p9 }
 0x32e   : > { %957 = shalt.err (!%p954_p11)
}
 0x32f   : > { %s1004_s4 = smov 256   ;;  %s1005_s6 = smov 16  }
 0x330   : > { %850 = dma.vmem_to_hbm [thread:$0]  (%p1465_p12), %s1385_s7, 4096, %s1383_s19, %s702_s16, %s1004_s4, %s1004_s4, %s1005_s6  }
 0x331 PF: > { %s731_s9 = sand.u32 1, %s984_s12   ;;  %p1466_p13 = scmp.ne.s32.totalorder %s1448_s25, 0 }
 0x332   : > { %p1467_p4 = scmp.ge.s32.totalorder %s996_s15, 2  ;;  %s732_s8 = scalar_lea.sflag [#allocation4], %s731_s9 }
 0x334   : > { %p857_p5 = pnand %p1467_p4, %p1466_p13 }
 0x336   : > { %p858_p7 = pneg %p857_p5 }
 0x338   : > { %979 = dma.done.wait (%p858_p7), %s732_s8, 4096  }
 0x339   : > { %981 = vsyncadd (%p858_p7), %s732_s8, 4294963200  ;;  %p16_p8 = scmp.ge.s32.totalorder %s1051_s18, 4   ;;  %s1468_s12 = smov %s988_s13 }
 0x33a   : > { %s1469_s13 = smov %s992_s14  ;;  %s1470_s14 = smov %s1063_s21 }
 0x33b   : > { %s1471_s15 = smov %s1051_s18  ;;  %18 = sbr.rel (!%p16_p8) target bundleno = 5 (0x5), region = 77 }
 0x340   :  { %737 = vsyncpa [#allocation3], 1 }
 0x341   :  { %739 = vsyncpa [#allocation3 + $0x1], 1 }
 0x342   :  { %740 = vsyncpa [#allocation4], 1 }
 0x343   :  { %742 = vsyncpa [#allocation4 + $0x1], 1 }

</bundles_post_ra>
